<compile_context>
chip_gen: v6e
topology: v6e:2x2x1
jax: 0.10.0
libtpu: 0.0.40
codegen_flags: <defaults>
</compile_context>

<pallas_src>
import jax
import jax.numpy as jnp
from jax.experimental import pallas as pl
from jax.experimental.pallas import tpu as pltpu

LANE = 128  # TPU vreg lane width


def _round_up(n, m):
    return -(-n // m) * m


# ----------------------------------------------------------------------------- kernel
def vae_kernel(
    x_ref,              # [TB, IMGp]      f32
    noise_ref,          # [TB, Zp]        f32 uniform[0,1) noise
    w1e_ref, b1e_ref,   # [IMGp, Hp] bf16, [1, Hp]     f32   encoder.fc1
    wms_ref, bms_ref,   # [Hp, 2*Zp] bf16, [1, 2*Zp]   f32   mean|sigma packed
    w1d_ref, b1d_ref,   # [Zp, Hp]  bf16,  [1, Hp]     f32   decoder.fc1
    w2d_ref, b2d_ref,   # [Hp, IMGp] bf16, [1, IMGp]   f32   decoder.fc2
    out_ref,            # [TB, IMGp]      f32
    ms_ref,             # [TB, 2*Zp]      f32 (mean | sigma packed)
):
    f32 = jnp.float32
    bf16 = jnp.bfloat16

    x = x_ref[...]

    # ---- Encoder ----
    h = jnp.dot(x.astype(bf16), w1e_ref[...], preferred_element_type=f32) + b1e_ref[...]
    h = jnp.maximum(h, 0.0)

    # Fused mean|sigma projection: one MXU pass instead of two.
    ms = jnp.dot(h.astype(bf16), wms_ref[...], preferred_element_type=f32) + bms_ref[...]
    half = ms_ref.shape[1] // 2            # static (== Zp)
    mean = ms[:, :half]
    sigma = ms[:, half:]

    # ---- Reparameterization: z = mean + exp(sigma)**0.5 * e, e ~ U[0,1) ----
    z = mean + jnp.exp(0.5 * sigma) * noise_ref[...]

    # ---- Decoder ----
    hd = jnp.dot(z.astype(bf16), w1d_ref[...], preferred_element_type=f32) + b1d_ref[...]
    hd = jnp.maximum(hd, 0.0)
    logits = jnp.dot(hd.astype(bf16), w2d_ref[...], preferred_element_type=f32) + b2d_ref[...]

    out_ref[...] = jax.nn.sigmoid(logits)
    ms_ref[...] = ms


# ----------------------------------------------------------------------------- wrapper
def pack_params(params, image_size, h_size, z_size):
    """Zero-pad feature dims to lane width (128), fuse mean|sigma weights, cast
    matmul weights to bf16. Done once, outside the kernel."""
    IMGp = _round_up(image_size, LANE)
    Hp = _round_up(h_size, LANE)
    Zp = _round_up(z_size, LANE)

    def pad2(a, rows, cols):
        return jnp.pad(a, ((0, rows - a.shape[0]), (0, cols - a.shape[1])))

    w1e = pad2(params["w1e"], IMGp, Hp).astype(jnp.bfloat16)
    b1e = pad2(params["b1e"], 1, Hp)

    wms = jnp.concatenate(
        [pad2(params["wm"], Hp, Zp), pad2(params["ws"], Hp, Zp)], axis=1
    ).astype(jnp.bfloat16)
    bms = jnp.concatenate(
        [pad2(params["bm"], 1, Zp), pad2(params["bs"], 1, Zp)], axis=1
    )

    w1d = pad2(params["w1d"], Zp, Hp).astype(jnp.bfloat16)
    b1d = pad2(params["b1d"], 1, Hp)
    w2d = pad2(params["w2d"], Hp, IMGp).astype(jnp.bfloat16)
    b2d = pad2(params["b2d"], 1, IMGp)

    return (w1e, b1e, wms, bms, w1d, b1d, w2d, b2d), (IMGp, Hp, Zp)


def vae_forward(x, noise, params, *, tb=8):
    """Fused VAE forward pass, batch-tiled. Returns (reconstruction, mean, sigma)."""
    B, IMG = x.shape
    Z = noise.shape[1]
    H = params["w1e"].shape[1]

    packed, (IMGp, Hp, Zp) = pack_params(params, IMG, H, Z)

    # Pad batch to a multiple of the batch tile; pad feature axes to lane width.
    Bp = _round_up(B, tb)
    x_p = jnp.pad(x, ((0, Bp - B), (0, IMGp - IMG)))
    noise_p = jnp.pad(noise, ((0, Bp - B), (0, Zp - Z)))

    grid = (Bp // tb,)

    batch_img_spec = pl.BlockSpec((tb, IMGp), lambda i: (i, 0))
    batch_z_spec = pl.BlockSpec((tb, Zp), lambda i: (i, 0))
    batch_ms_spec = pl.BlockSpec((tb, 2 * Zp), lambda i: (i, 0))

    def resident_spec(a):
        # Constant block index -> fetched once, stays VMEM-resident across the grid.
        return pl.BlockSpec(a.shape, lambda i: (0, 0))

    in_specs = [batch_img_spec, batch_z_spec] + [resident_spec(a) for a in packed]

    out_shapes = (
        jax.ShapeDtypeStruct((Bp, IMGp), jnp.float32),    # reconstruction (padded)
        jax.ShapeDtypeStruct((Bp, 2 * Zp), jnp.float32),  # mean|sigma packed (padded)
    )
    out_specs = (batch_img_spec, batch_ms_spec)

    out_p, ms_p = pl.pallas_call(
        vae_kernel,
        grid=grid,
        in_specs=in_specs,
        out_shape=out_shapes,
        out_specs=out_specs,
        compiler_params=pltpu.CompilerParams(
            dimension_semantics=("parallel",),
        ),
    )(x_p, noise_p, *packed)

    out = out_p[:B, :IMG]
    mean = ms_p[:B, :Z]
    sigma = ms_p[:B, Zp:Zp + Z]
    return out, mean, sigma


# ----------------------------------------------------------------------------- params
def init_params(key, image_size, h_size, z_size):
    """Mimics PyTorch nn.Linear default init U(-1/sqrt(fan_in), 1/sqrt(fan_in)).
    Weights stored as [in, out]; biases as [1, out]."""
    def linear(k, fan_in, fan_out):
        kw, kb = jax.random.split(k)
        bound = 1.0 / jnp.sqrt(fan_in)
        w = jax.random.uniform(kw, (fan_in, fan_out), jnp.float32, -bound, bound)
        b = jax.random.uniform(kb, (1, fan_out), jnp.float32, -bound, bound)
        return w, b

    k1, k2, k3, k4, k5 = jax.random.split(key, 5)
    w1e, b1e = linear(k1, image_size, h_size)   # encoder.fc1
    wm,  bm  = linear(k2, h_size, z_size)       # encoder.mean_layer
    ws,  bs  = linear(k3, h_size, z_size)       # encoder.sigma_layer
    w1d, b1d = linear(k4, z_size, h_size)       # decoder.fc1
    w2d, b2d = linear(k5, h_size, image_size)   # decoder.fc2
    return dict(w1e=w1e, b1e=b1e, wm=wm, bm=bm, ws=ws, bs=bs,
                w1d=w1d, b1d=b1d, w2d=w2d, b2d=b2d)


def reference_forward(x, noise, p):
    """Pure-JAX reference with the same bf16-matmul / f32-accumulate numerics."""
    bf16 = jnp.bfloat16
    f32 = jnp.float32

    def mm(a, w):
        return jnp.dot(a.astype(bf16), w.astype(bf16), preferred_element_type=f32)

    h = jnp.maximum(mm(x, p["w1e"]) + p["b1e"], 0.0)
    mean = mm(h, p["wm"]) + p["bm"]
    sigma = mm(h, p["ws"]) + p["bs"]
    z = mean + jnp.exp(0.5 * sigma) * noise
    hd = jnp.maximum(mm(z, p["w1d"]) + p["b1d"], 0.0)
    out = jax.nn.sigmoid(mm(hd, p["w2d"]) + p["b2d"])
    return out, mean, sigma


# ----------------------------------------------------------------------------- main
if __name__ == "__main__":
    # Small shapes consistent with VAE(image_size, h_size, z_size).
    B, IMAGE_SIZE, H_SIZE, Z_SIZE = 32, 128, 64, 16
    TB = 8  # batch tile (multiple of 8 sublanes)

    key = jax.random.PRNGKey(0)
    k_params, k_x, k_noise = jax.random.split(key, 3)

    params = init_params(k_params, IMAGE_SIZE, H_SIZE, Z_SIZE)
    x = jax.random.uniform(k_x, (B, IMAGE_SIZE), jnp.float32)       # flattened image in [0,1)
    noise = jax.random.uniform(k_noise, (B, Z_SIZE), jnp.float32)   # torch.rand_like(sigma) equivalent

    out, mean, sigma = vae_forward(x, noise, params, tb=TB)
    jax.block_until_ready((out, mean, sigma))

    out_ref, mean_ref, sigma_ref = reference_forward(x, noise, params)

    assert jnp.allclose(out, out_ref, atol=2e-3, rtol=2e-3), "output mismatch"
    assert jnp.allclose(mean, mean_ref, atol=2e-3, rtol=2e-3), "mean mismatch"
    assert jnp.allclose(sigma, sigma_ref, atol=2e-3, rtol=2e-3), "sigma mismatch"

    print("KERNEL_OK")
</pallas_src>

<mosaic_0001>
module attributes {stable_mosaic.version = 11 : i64} {
  func.func @vae_kernel(%arg0: i32, %arg1: memref<8x128xf32, #tpu.memory_space<vmem>>, %arg2: memref<8x128xf32, #tpu.memory_space<vmem>>, %arg3: memref<128x128xbf16, #tpu.memory_space<vmem>>, %arg4: memref<1x128xf32, #tpu.memory_space<vmem>>, %arg5: memref<128x256xbf16, #tpu.memory_space<vmem>>, %arg6: memref<1x256xf32, #tpu.memory_space<vmem>>, %arg7: memref<128x128xbf16, #tpu.memory_space<vmem>>, %arg8: memref<1x128xf32, #tpu.memory_space<vmem>>, %arg9: memref<128x128xbf16, #tpu.memory_space<vmem>>, %arg10: memref<1x128xf32, #tpu.memory_space<vmem>>, %arg11: memref<8x128xf32, #tpu.memory_space<vmem>>, %arg12: memref<8x256xf32, #tpu.memory_space<vmem>>) attributes {dimension_semantics = [#tpu.dimension_semantics<parallel>], iteration_bounds = array<i64: 4>, scalar_prefetch = 0 : i64, scratch_operands = 0 : i64, tpu.core_type = #tpu.core_type<tc>, window_params = [{transform_indices = @transform_0, window_bounds = array<i64: 8, 128>}, {transform_indices = @transform_1, window_bounds = array<i64: 8, 128>}, {pipeline_mode = #tpu.pipeline_mode<synchronous>, transform_indices = @transform_2, window_bounds = array<i64: 128, 128>}, {pipeline_mode = #tpu.pipeline_mode<synchronous>, transform_indices = @transform_3, window_bounds = array<i64: 1, 128>}, {pipeline_mode = #tpu.pipeline_mode<synchronous>, transform_indices = @transform_4, window_bounds = array<i64: 128, 256>}, {pipeline_mode = #tpu.pipeline_mode<synchronous>, transform_indices = @transform_5, window_bounds = array<i64: 1, 256>}, {pipeline_mode = #tpu.pipeline_mode<synchronous>, transform_indices = @transform_6, window_bounds = array<i64: 128, 128>}, {pipeline_mode = #tpu.pipeline_mode<synchronous>, transform_indices = @transform_7, window_bounds = array<i64: 1, 128>}, {pipeline_mode = #tpu.pipeline_mode<synchronous>, transform_indices = @transform_8, window_bounds = array<i64: 128, 128>}, {pipeline_mode = #tpu.pipeline_mode<synchronous>, transform_indices = @transform_9, window_bounds = array<i64: 1, 128>}, {transform_indices = @transform_10, window_bounds = array<i64: 8, 128>}, {transform_indices = @transform_11, window_bounds = array<i64: 8, 256>}]} {
    %c0 = arith.constant 0 : index
    %c0_0 = arith.constant 0 : index
    %0 = vector.load %arg1[%c0, %c0_0] : memref<8x128xf32, #tpu.memory_space<vmem>>, vector<8x128xf32>
    %1 = arith.truncf %0 : vector<8x128xf32> to vector<8x128xbf16>
    %c0_1 = arith.constant 0 : index
    %c0_2 = arith.constant 0 : index
    %2 = vector.load %arg3[%c0_1, %c0_2] : memref<128x128xbf16, #tpu.memory_space<vmem>>, vector<128x128xbf16>
    %cst = arith.constant dense<0.000000e+00> : vector<8x128xf32>
    %3 = tpu.matmul %1, %2, %cst {dimension_numbers = #tpu.dot_dimension_numbers<[1], [0], [0], [1], [0, 0, 1, 1], [], []>} : vector<8x128xbf16>, vector<128x128xbf16>, vector<8x128xf32> -> vector<8x128xf32>
    %c0_3 = arith.constant 0 : index
    %c0_4 = arith.constant 0 : index
    %4 = vector.load %arg4[%c0_3, %c0_4] : memref<1x128xf32, #tpu.memory_space<vmem>>, vector<1x128xf32>
    %5 = vector.broadcast %4 : vector<1x128xf32> to vector<8x128xf32>
    %6 = arith.addf %3, %5 : vector<8x128xf32>
    %cst_5 = arith.constant 0.000000e+00 : f32
    %7 = vector.broadcast %cst_5 : f32 to vector<8x128xf32>
    %8 = arith.maximumf %6, %7 : vector<8x128xf32>
    %9 = arith.truncf %8 : vector<8x128xf32> to vector<8x128xbf16>
    %c0_6 = arith.constant 0 : index
    %c0_7 = arith.constant 0 : index
    %10 = vector.load %arg5[%c0_6, %c0_7] : memref<128x256xbf16, #tpu.memory_space<vmem>>, vector<128x256xbf16>
    %cst_8 = arith.constant dense<0.000000e+00> : vector<8x256xf32>
    %11 = tpu.matmul %9, %10, %cst_8 {dimension_numbers = #tpu.dot_dimension_numbers<[1], [0], [0], [1], [0, 0, 1, 1], [], []>} : vector<8x128xbf16>, vector<128x256xbf16>, vector<8x256xf32> -> vector<8x256xf32>
    %c0_9 = arith.constant 0 : index
    %c0_10 = arith.constant 0 : index
    %12 = vector.load %arg6[%c0_9, %c0_10] : memref<1x256xf32, #tpu.memory_space<vmem>>, vector<1x256xf32>
    %13 = vector.broadcast %12 : vector<1x256xf32> to vector<8x256xf32>
    %14 = arith.addf %11, %13 : vector<8x256xf32>
    %15 = vector.extract_strided_slice %14 {offsets = [0, 0], sizes = [8, 128], strides = [1, 1]} : vector<8x256xf32> to vector<8x128xf32>
    %16 = vector.extract_strided_slice %14 {offsets = [0, 128], sizes = [8, 128], strides = [1, 1]} : vector<8x256xf32> to vector<8x128xf32>
    %cst_11 = arith.constant 5.000000e-01 : f32
    %17 = vector.broadcast %cst_11 : f32 to vector<8x128xf32>
    %18 = arith.mulf %17, %16 : vector<8x128xf32>
    %19 = math.exp %18 : vector<8x128xf32>
    %c0_12 = arith.constant 0 : index
    %c0_13 = arith.constant 0 : index
    %20 = vector.load %arg2[%c0_12, %c0_13] : memref<8x128xf32, #tpu.memory_space<vmem>>, vector<8x128xf32>
    %21 = arith.mulf %19, %20 : vector<8x128xf32>
    %22 = arith.addf %15, %21 : vector<8x128xf32>
    %23 = arith.truncf %22 : vector<8x128xf32> to vector<8x128xbf16>
    %c0_14 = arith.constant 0 : index
    %c0_15 = arith.constant 0 : index
    %24 = vector.load %arg7[%c0_14, %c0_15] : memref<128x128xbf16, #tpu.memory_space<vmem>>, vector<128x128xbf16>
    %cst_16 = arith.constant dense<0.000000e+00> : vector<8x128xf32>
    %25 = tpu.matmul %23, %24, %cst_16 {dimension_numbers = #tpu.dot_dimension_numbers<[1], [0], [0], [1], [0, 0, 1, 1], [], []>} : vector<8x128xbf16>, vector<128x128xbf16>, vector<8x128xf32> -> vector<8x128xf32>
    %c0_17 = arith.constant 0 : index
    %c0_18 = arith.constant 0 : index
    %26 = vector.load %arg8[%c0_17, %c0_18] : memref<1x128xf32, #tpu.memory_space<vmem>>, vector<1x128xf32>
    %27 = vector.broadcast %26 : vector<1x128xf32> to vector<8x128xf32>
    %28 = arith.addf %25, %27 : vector<8x128xf32>
    %cst_19 = arith.constant 0.000000e+00 : f32
    %29 = vector.broadcast %cst_19 : f32 to vector<8x128xf32>
    %30 = arith.maximumf %28, %29 : vector<8x128xf32>
    %31 = arith.truncf %30 : vector<8x128xf32> to vector<8x128xbf16>
    %c0_20 = arith.constant 0 : index
    %c0_21 = arith.constant 0 : index
    %32 = vector.load %arg9[%c0_20, %c0_21] : memref<128x128xbf16, #tpu.memory_space<vmem>>, vector<128x128xbf16>
    %cst_22 = arith.constant dense<0.000000e+00> : vector<8x128xf32>
    %33 = tpu.matmul %31, %32, %cst_22 {dimension_numbers = #tpu.dot_dimension_numbers<[1], [0], [0], [1], [0, 0, 1, 1], [], []>} : vector<8x128xbf16>, vector<128x128xbf16>, vector<8x128xf32> -> vector<8x128xf32>
    %c0_23 = arith.constant 0 : index
    %c0_24 = arith.constant 0 : index
    %34 = vector.load %arg10[%c0_23, %c0_24] : memref<1x128xf32, #tpu.memory_space<vmem>>, vector<1x128xf32>
    %35 = vector.broadcast %34 : vector<1x128xf32> to vector<8x128xf32>
    %36 = arith.addf %33, %35 : vector<8x128xf32>
    %37 = arith.negf %36 : vector<8x128xf32>
    %38 = math.exp %37 : vector<8x128xf32>
    %cst_25 = arith.constant 1.000000e+00 : f32
    %39 = vector.broadcast %cst_25 : f32 to vector<8x128xf32>
    %40 = arith.addf %39, %38 : vector<8x128xf32>
    %41 = arith.divf %39, %40 : vector<8x128xf32>
    %c0_26 = arith.constant 0 : index
    %c0_27 = arith.constant 0 : index
    %42 = vector.load %arg11[%c0_26, %c0_27] : memref<8x128xf32, #tpu.memory_space<vmem>>, vector<8x128xf32>
    tpu.vector_store %arg11[%c0_26, %c0_27], %41 {strides = array<i32>} : memref<8x128xf32, #tpu.memory_space<vmem>>, vector<8x128xf32>,
    %c0_28 = arith.constant 0 : index
    %c0_29 = arith.constant 0 : index
    %43 = vector.load %arg12[%c0_28, %c0_29] : memref<8x256xf32, #tpu.memory_space<vmem>>, vector<8x256xf32>
    tpu.vector_store %arg12[%c0_28, %c0_29], %14 {strides = array<i32>} : memref<8x256xf32, #tpu.memory_space<vmem>>, vector<8x256xf32>,
    return
  }
  func.func @transform_0(%arg0: i32) -> (i32, i32) {
    %c0_i32 = arith.constant 0 : i32
    %c0_i32_0 = arith.constant 0 : i32
    return %arg0, %c0_i32 : i32, i32
  }
  func.func @transform_1(%arg0: i32) -> (i32, i32) {
    %c0_i32 = arith.constant 0 : i32
    %c0_i32_0 = arith.constant 0 : i32
    return %arg0, %c0_i32 : i32, i32
  }
  func.func @transform_2(%arg0: i32) -> (i32, i32) {
    %c0_i32 = arith.constant 0 : i32
    %c0_i32_0 = arith.constant 0 : i32
    %c0_i32_1 = arith.constant 0 : i32
    return %c0_i32, %c0_i32_0 : i32, i32
  }
  func.func @transform_3(%arg0: i32) -> (i32, i32) {
    %c0_i32 = arith.constant 0 : i32
    %c0_i32_0 = arith.constant 0 : i32
    %c0_i32_1 = arith.constant 0 : i32
    return %c0_i32, %c0_i32_0 : i32, i32
  }
  func.func @transform_4(%arg0: i32) -> (i32, i32) {
    %c0_i32 = arith.constant 0 : i32
    %c0_i32_0 = arith.constant 0 : i32
    %c0_i32_1 = arith.constant 0 : i32
    return %c0_i32, %c0_i32_0 : i32, i32
  }
  func.func @transform_5(%arg0: i32) -> (i32, i32) {
    %c0_i32 = arith.constant 0 : i32
    %c0_i32_0 = arith.constant 0 : i32
    %c0_i32_1 = arith.constant 0 : i32
    return %c0_i32, %c0_i32_0 : i32, i32
  }
  func.func @transform_6(%arg0: i32) -> (i32, i32) {
    %c0_i32 = arith.constant 0 : i32
    %c0_i32_0 = arith.constant 0 : i32
    %c0_i32_1 = arith.constant 0 : i32
    return %c0_i32, %c0_i32_0 : i32, i32
  }
  func.func @transform_7(%arg0: i32) -> (i32, i32) {
    %c0_i32 = arith.constant 0 : i32
    %c0_i32_0 = arith.constant 0 : i32
    %c0_i32_1 = arith.constant 0 : i32
    return %c0_i32, %c0_i32_0 : i32, i32
  }
  func.func @transform_8(%arg0: i32) -> (i32, i32) {
    %c0_i32 = arith.constant 0 : i32
    %c0_i32_0 = arith.constant 0 : i32
    %c0_i32_1 = arith.constant 0 : i32
    return %c0_i32, %c0_i32_0 : i32, i32
  }
  func.func @transform_9(%arg0: i32) -> (i32, i32) {
    %c0_i32 = arith.constant 0 : i32
    %c0_i32_0 = arith.constant 0 : i32
    %c0_i32_1 = arith.constant 0 : i32
    return %c0_i32, %c0_i32_0 : i32, i32
  }
  func.func @transform_10(%arg0: i32) -> (i32, i32) {
    %c0_i32 = arith.constant 0 : i32
    %c0_i32_0 = arith.constant 0 : i32
    return %arg0, %c0_i32 : i32, i32
  }
  func.func @transform_11(%arg0: i32) -> (i32, i32) {
    %c0_i32 = arith.constant 0 : i32
    %c0_i32_0 = arith.constant 0 : i32
    return %arg0, %c0_i32 : i32, i32
  }
}

</mosaic_0001>

<bundles_post_ra>
// kernel: tpu_custom_call.1
= control target key start
LH: loop header
LB: loop body
LE: loop exit
PB: predicated region body
PF: predicated region fallthrough
CT: control target
= control target key end

     0   :  { %s2210_s0 = inlined_call_operand.hbm [shape: f32[32,128], index: 0, kind: input, shape index: {}]   ;;  %s2211_s1 = inlined_call_operand.hbm [shape: f32[32,128], index: 1, kind: input, shape index: {}]   ;;  %s2212_s2 = inlined_call_operand.hbm [shape: bf16[128,128], index: 2, kind: input, shape index: {}]   ;;  %s2213_s3 = inlined_call_operand.vmem [shape: f32[1,128], index: 3, kind: input, shape index: {}]   ;;  %s2214_s4 = inlined_call_operand.hbm [shape: bf16[128,256], index: 4, kind: input, shape index: {}]   ;;  %s2215_s5 = inlined_call_operand.vmem [shape: f32[1,256], index: 5, kind: input, shape index: {}]   ;;  %s2216_s6 = inlined_call_operand.hbm [shape: bf16[128,128], index: 6, kind: input, shape index: {}]   ;;  %s2217_s7 = inlined_call_operand.vmem [shape: f32[1,128], index: 7, kind: input, shape index: {}]   ;;  %s2218_s8 = inlined_call_operand.hbm [shape: bf16[128,128], index: 8, kind: input, shape index: {}]   ;;  %s2219_s9 = inlined_call_operand.vmem [shape: f32[1,128], index: 9, kind: input, shape index: {}]   ;;  %s2220_s10 = inlined_call_operand.hbm [shape: f32[32,128], index: 10, kind: output, shape index: {0}]   ;;  %s2221_s11 = inlined_call_operand.hbm [shape: f32[32,256], index: 11, kind: output, shape index: {1}]  }
   0x1   :  { %2230 = sst [smem:[#allocation27_spill]] %s2212_s2 }
   0x2   :  { %2231 = sst [smem:[#allocation28_spill]] %s2214_s4 }
   0x3   :  { %2232 = sst [smem:[#allocation29_spill]] %s2216_s6 }
   0x4   :  { %2233 = sst [smem:[#allocation30_spill]] %s2218_s8 }
   0x5   :  { %17 = vsyncpa [#allocation3], 0 }
   0x6   :  { %19 = vsyncpa [#allocation3 + $0x1], 0 }
   0x7   :  { %20 = vsyncpa [#allocation6], 0 }
   0x8   :  { %22 = vsyncpa [#allocation6 + $0x1], 0 }
   0x9   :  { %23 = vsyncpa [#allocation9], 0 }
   0xa   :  { %24 = vsyncpa [#allocation12], 0 }
   0xb   :  { %25 = vsyncpa [#allocation4], 0 }
   0xc   :  { %27 = vsyncpa [#allocation4 + $0x1], 0 }
   0xd   :  { %28 = vsyncpa [#allocation15], 0 }
   0xe   :  { %30 = vsyncpa [#allocation15 + $0x1], 0  ;;  %s1873_s17 = smov 0   ;;  %s1875_s18 = smov 0  }
   0xf   :  { %s1877_s19 = smov 0   ;;  %s1879_s20 = smov 0  }
  0x10 LB: > { %2234 = sst [smem:[#allocation23_spill]] %s1792_s19  ;;  %s1798_s21 = smov [#allocation7]   ;;  %s1796_s20 = sphi %s1879_s20, %s2260_s20   ;;  %s1792_s19 = sphi %s1877_s19, %s2262_s19   ;;  %s1788_s18 = sphi %s1875_s18, %s2264_s18   ;;  %s1784_s17 = sphi %s1873_s17, %s2263_s17  }
  0x11   : > { %s325_s22 = sshll.u32 %s1798_s21, 4  ;;  %s1894_s23 = sadd.s32 4294967295, %s1796_s20   ;;  %s326_s22 = int_to_ptr.vmem [resolvable:$true] %s325_s22 }
  0x12   : > { %p1210_p0 = scmp.ge.s32.totalorder %s1796_s20, 1  ;;  %p2226_p1 = scmp.eq.s32.totalorder %s1894_s23, 0 }
  0x13   : > { %p313_p2 = scmp.lt.s32.totalorder %s1796_s20, 5  ;;  %s1799_s25 = smov [#allocation8]  }
  0x14   : > { %s341_s26 = sshll.u32 %s1799_s25, 4  ;;  %s1800_s28 = smov [#allocation10]   ;;  %s1911_s26 = int_to_ptr.vmem [resolvable:$true] %s341_s26 }
  0x15   : > { %p1899_p3 = pnand %p1210_p0, %p313_p2  ;;  %s1913_s29 = sshll.u32 %s1800_s28, 4  ;;  %s358_s29 = int_to_ptr.vmem [resolvable:$true] %s1913_s29 }
  0x16   : > { %s1537_s30 = scalar_lea.vmem %s326_s22, 1024  ;;  %p1545_p10 = scmp.lt.s32.totalorder %s326_s22, %s326_s22 }
  0x17   : > { %s2235_s24 = scalar_select %p1899_p3, 1, 0 }
  0x18   : > { %p1392_p4 = pneg %p1899_p3  ;;  %p1538_p7 = scmp.ne.s32.totalorder %s326_s22, %s1537_s30 }
  0x19   : > { %p1546_p11 = scmp.lt.s32.totalorder %s1537_s30, %s1537_s30 }
  0x1a   : > { %p1907_p5 = pnand %p1392_p4, %p2226_p1 }
  0x1b   : > { %p1547_p12 = por %p1546_p11, %p1545_p10 }
  0x1c   : > { %p1528_p6 = pneg %p1907_p5 }
  0x1e   : > { %p1540_p8 = pnand %p1538_p7, %p1528_p6 }
  0x20   : > { %p1541_p9 = pneg %p1540_p8 }
  0x22   : > { %p1548_p13 = pnand %p1547_p12, %p1541_p9 }
  0x24   : > { %1551 = shalt.err (!%p1548_p13)
}
  0x25   : > { %s1801_s12 = smov 64   ;;  %s1802_s13 = smov 4  }
  0x26   : > { %s2237_s2 = sld [smem:[#allocation27_spill]]  ;;  %s1563_s16 = scalar_lea.vmem %s1911_s26, 2048 }
  0x27   : > { %p1564_p0 = scmp.ne.s32.totalorder %s1911_s26, %s1563_s16  ;;  %p1571_p7 = scmp.lt.s32.totalorder %s1911_s26, %s1911_s26 }
  0x28   : > { %p1572_p8 = scmp.lt.s32.totalorder %s1563_s16, %s1563_s16 }
  0x29   : > { %p1566_p2 = pnand %p1564_p0, %p1528_p6 }
  0x2a   : > { %p1573_p9 = por %p1572_p8, %p1571_p7 }
  0x2b   : > { %p1567_p4 = pneg %p1566_p2 }
  0x2c   : > { %1395 = dma.hbm_to_vmem [thread:$0]  (!%p1907_p5), %s2237_s2, 1024, %s326_s22, [#allocation6], %s1801_s12, %s1801_s12, %s1802_s13  }
  0x2d   : > { %p1574_p10 = pnand %p1573_p9, %p1567_p4 }
  0x2f   : > { %1577 = shalt.err (!%p1574_p10)
}
  0x30   : > { %s1803_s21 = smov 128   ;;  %s1804_s25 = smov 8  }
  0x31   : > { %s2238_s4 = sld [smem:[#allocation28_spill]]  ;;  %s1589_s30 = scalar_lea.vmem %s358_s29, 1024 }
  0x32   : > { %p1590_p11 = scmp.ne.s32.totalorder %s358_s29, %s1589_s30  ;;  %p1597_p0 = scmp.lt.s32.totalorder %s358_s29, %s358_s29 }
  0x33   : > { %p1598_p2 = scmp.lt.s32.totalorder %s1589_s30, %s1589_s30 }
  0x34   : > { %p1592_p12 = pnand %p1590_p11, %p1528_p6 }
  0x35   : > { %p1599_p4 = por %p1598_p2, %p1597_p0 }
  0x36   : > { %p1593_p13 = pneg %p1592_p12 }
  0x37   : > { %1398 = dma.hbm_to_vmem [thread:$0]  (!%p1907_p5), %s2238_s4, 2048, %s1911_s26, [#allocation9], %s1803_s21, %s1803_s21, %s1804_s25  }
  0x38   : > { %p1600_p7 = pnand %p1599_p4, %p1593_p13 }
  0x3a   : > { %1603 = shalt.err (!%p1600_p7)
}
  0x3b   : > { %s2239_s6 = sld [smem:[#allocation29_spill]]  ;;  %s1805_s26 = smov [#allocation11]  }
  0x3c   : > { %s373_s16 = sshll.u32 %s1805_s26, 4  ;;  %s374_s16 = int_to_ptr.vmem [resolvable:$true] %s373_s16 }
  0x3d   : > { %s1615_s21 = scalar_lea.vmem %s374_s16, 1024  ;;  %p1623_p11 = scmp.lt.s32.totalorder %s374_s16, %s374_s16 }
  0x3e   : > { %p1616_p8 = scmp.ne.s32.totalorder %s374_s16, %s1615_s21  ;;  %p1624_p12 = scmp.lt.s32.totalorder %s1615_s21, %s1615_s21 }
  0x40   : > { %p1618_p9 = pnand %p1616_p8, %p1528_p6  ;;  %p1625_p13 = por %p1624_p12, %p1623_p11 }
  0x41   : > { %1401 = dma.hbm_to_vmem [thread:$0]  (!%p1907_p5), %s2239_s6, 1024, %s358_s29, [#allocation9], %s1801_s12, %s1801_s12, %s1802_s13  }
  0x42   : > { %p1619_p10 = pneg %p1618_p9 }
  0x44   : > { %p1626_p0 = pnand %p1625_p13, %p1619_p10 }
  0x46   : > { %1629 = shalt.err (!%p1626_p0)
}
  0x47   : > { %s2240_s8 = sld [smem:[#allocation30_spill]]  ;;  %s1209_s27 = sadd.s32 4294967294, %s1796_s20  }
  0x48   : > { %s1966_s22 = sadd.s32 1, %s1796_s20   ;;  %s43_s30 = sadd.s32 1, %s1792_s19 }
  0x49   : > { %2241 = sst [smem:[#allocation24_spill]] %s1966_s22  ;;  %s40_s28 = ssub.s32 %s1796_s20, %s1966_s22 }
  0x4a   : > { %p41_p6 = scmp.eq.s32.totalorder %s40_s28, 0  ;;  %p50_p2 = scmp.ne.s32.totalorder %s1792_s19, %s1788_s18 }
  0x4b   : > { %p51_p4 = scmp.eq.s32.totalorder %s1796_s20, 0  ;;  %p56_p7 = scmp.ne.s32.totalorder %s1788_s18, %s1784_s17 }
  0x4c   : > { %s1977_s14 = scalar_select %p41_p6, %s1792_s19, %s43_s30  }
  0x4d   : > { %1404 = dma.hbm_to_vmem [thread:$0]  (!%p1907_p5), %s2240_s8, 1024, %s374_s16, [#allocation12], %s1801_s12, %s1801_s12, %s1802_s13  }
  0x4e   : > { %2242 = sst [smem:[#allocation25_spill]] %s1977_s14  ;;  %p1979_p8 = por %p51_p4, %p50_p2 }
  0x4f   : > { %p1985_p5 = por %p2226_p1, %p56_p7  ;;  %p274_p9 = scmp.eq.s32.totalorder %s1894_s23, 3 }
  0x50   : > { %p280_p10 = scmp.eq.s32.totalorder %s1209_s27, 3  ;;  %p1423_p11 = scmp.lt.s32.totalorder %s1796_s20, 4 }
  0x51   : > { %s2244_s12 = scalar_select %p1985_p5, 1, 0 }
  0x52   : > { %s390_s13 = sand.u32 1, %s1792_s19   ;;  %p1992_p12 = por %p274_p9, %p50_p2 }
  0x53   : > { %p1996_p13 = por %p280_p10, %p56_p7  ;;  %s2000_s21 = sshll.u32 %s390_s13, 3 }
  0x54   : > { %s2245_s26 = scalar_select %p1992_p12, 1, 0 }
  0x55   : > { %s2246_s16 = scalar_select %p1996_p13, 1, 0 }
  0x56   : > { %s1217_s29 = sshll.u32 %s1796_s20, 7  ;;  %s394_s27 = scalar_lea.vmem [#allocation2], %s2000_s21 }
  0x57   : > { %2247 = sst [smem:[#allocation26_spill]] %s2246_s16  ;;  %s2006_s30 = scalar_lea.hbm %s2210_s0, %s1217_s29 }
  0x58   : > { %s401_s2 = sshll.u32 %s394_s27, 4  ;;  %p2013_p0 = pnand %p1423_p11, %p1979_p8  ;;  %s2009_s2 = int_to_ptr.vmem [resolvable:$true] %s401_s2 }
  0x59   : > { %s2020_s25 = scalar_lea.hbm %s2211_s1, %s1217_s29  ;;  %s408_s28 = sand.u32 1, %s1796_s20  }
  0x5a   : > { %s391_s14 = scalar_lea.sflag [#allocation3], %s390_s13  ;;  %s1630_s19 = scalar_lea.hbm %s2006_s30, 128 }
  0x5b   : > { %p1631_p6 = scmp.ne.s32.totalorder %s2006_s30, %s1630_s19  ;;  %p1632_p2 = pneg %p2013_p0 }
  0x5c   : > { %s1635_s22 = scalar_lea.hbm %s2210_s0, 512  ;;  %p1636_p8 = scmp.lt.s32.totalorder %s2006_s30, %s2210_s0 }
  0x5d   : > { %p1633_p4 = pnand %p1632_p2, %p1631_p6  ;;  %p1637_p9 = scmp.lt.s32.totalorder %s1635_s22, %s1630_s19 }
  0x5f   : > { %p1634_p7 = pneg %p1633_p4  ;;  %p1638_p10 = por %p1637_p9, %p1636_p8 }
  0x61   : > { %p1639_p11 = pnand %p1638_p10, %p1634_p7 }
  0x63   : > { %1642 = shalt.err (!%p1639_p11)
}
  0x64   : > { %s1643_s8 = scalar_lea.vmem %s2009_s2, 128  ;;  %s1806_s13 = smov [#allocation2]  }
  0x65   : > { %p1644_p1 = scmp.ne.s32.totalorder %s2009_s2, %s1643_s8  ;;  %s1648_s29 = sshll.u32 %s1806_s13, 4  ;;  %s1649_s29 = int_to_ptr.vmem [resolvable:$false] %s1648_s29 }
  0x66   : > { %s1650_s15 = scalar_lea.vmem %s1649_s29, 256  ;;  %p1651_p13 = scmp.lt.s32.totalorder %s2009_s2, %s1649_s29 }
  0x67   : > { %p1646_p6 = pnand %p1644_p1, %p1632_p2  ;;  %p1652_p12 = scmp.lt.s32.totalorder %s1650_s15, %s1643_s8 }
  0x69   : > { %p1647_p4 = pneg %p1646_p6  ;;  %p1653_p5 = por %p1652_p12, %p1651_p13 }
  0x6b   : > { %p1654_p8 = pnand %p1653_p5, %p1647_p4 }
  0x6d   : > { %1657 = shalt.err (!%p1654_p8)
}
  0x6e   : > { %1408 = dma.hbm_to_vmem [thread:$0]  (!%p2013_p0), %s2006_s30, 128, %s2009_s2, %s391_s14  }
  0x6f   : > { %s412_s19 = scalar_lea.vmem [#allocation5], %s2000_s21  ;;  %s409_s16 = scalar_lea.sflag [#allocation6], %s408_s28 }
  0x70   : > { %s419_s22 = sshll.u32 %s412_s19, 4  ;;  %s1658_s27 = scalar_lea.hbm %s2020_s25, 128  ;;  %s420_s22 = int_to_ptr.vmem [resolvable:$true] %s419_s22 }
  0x71   : > { %p1659_p1 = scmp.ne.s32.totalorder %s2020_s25, %s1658_s27  ;;  %s1663_s13 = scalar_lea.hbm %s2211_s1, 512 }
  0x72   : > { %p1664_p13 = scmp.lt.s32.totalorder %s2020_s25, %s2211_s1  ;;  %p1665_p7 = scmp.lt.s32.totalorder %s1663_s13, %s1658_s27 }
  0x73   : > { %p1661_p5 = pnand %p1659_p1, %p1632_p2 }
  0x74   : > { %p1666_p9 = por %p1665_p7, %p1664_p13 }
  0x75   : > { %p1662_p12 = pneg %p1661_p5 }
  0x77   : > { %p1667_p10 = pnand %p1666_p9, %p1662_p12 }
  0x79   : > { %1670 = shalt.err (!%p1667_p10)
}
  0x7a   : > { %s1671_s2 = scalar_lea.vmem %s420_s22, 128  ;;  %s1807_s14 = smov [#allocation5]  }
  0x7b   : > { %p1672_p11 = scmp.ne.s32.totalorder %s420_s22, %s1671_s2  ;;  %s1676_s21 = sshll.u32 %s1807_s14, 4  ;;  %s1677_s21 = int_to_ptr.vmem [resolvable:$false] %s1676_s21 }
  0x7c   : > { %s1678_s30 = scalar_lea.vmem %s1677_s21, 256  ;;  %p1679_p8 = scmp.lt.s32.totalorder %s420_s22, %s1677_s21 }
  0x7d   : > { %p1674_p6 = pnand %p1672_p11, %p1632_p2  ;;  %p1680_p1 = scmp.lt.s32.totalorder %s1678_s30, %s1671_s2 }
  0x7f   : > { %p1675_p4 = pneg %p1674_p6  ;;  %p1681_p5 = por %p1680_p1, %p1679_p8 }
  0x81   : > { %p1682_p3 = pnand %p1681_p5, %p1675_p4 }
  0x83   : > { %1685 = shalt.err (!%p1682_p3)
}
  0x84   : > { %1411 = dma.hbm_to_vmem [thread:$0]  (!%p2013_p0), %s2020_s25, 128, %s420_s22, %s409_s16  }
  0x85   : > { %p2249_p12 = scmp.ne.s32.totalorder %s2235_s24, 0 }
  0x86   : > { %s2071_s28 = sand.u32 (!%p2249_p12), 1, %s1788_s18   ;;  %p2250_p2 = scmp.ne.s32.totalorder (!%p2249_p12), %s2244_s12, 0 }
  0x87   : > { %428 = sbr.rel (%p2249_p12) target bundleno = 1046 (0x416), region = 60  ;;  %s2074_s19 = sshll.u32 (!%p2249_p12), %s2071_s28, 3 }
  0x88   : > { %s431_s27 = scalar_lea.sflag (!%p2249_p12), [#allocation3], %s2071_s28  ;;  %s434_s6 = scalar_lea.vmem (!%p2249_p12), [#allocation2], %s2074_s19 }
  0x8c   : > { %1755 = dma.done.wait (%p2250_p2), %s431_s27, 128  }
  0x8d   : > { %1757 = vsyncadd (%p2250_p2), %s431_s27, 4294967168  ;;  %s439_s4 = sand.u32 1, %s1894_s23   ;;  %s443_s25 = scalar_lea.vmem [#allocation5], %s2074_s19 }
  0x8e   : > { %s440_s24 = scalar_lea.sflag [#allocation6], %s439_s4 }
  0x8f   : > { %1759 = dma.done.wait (%p2250_p2), %s440_s24, 128  }
  0x90   : > { %1761 = vsyncadd (%p2250_p2), %s440_s24, 4294967168  ;;  %p2251_p3 = scmp.eq.s32.totalorder %s1894_s23, 0 }
  0x92   : > { %1763 = dma.done.wait (%p2251_p3), [#allocation6], 1024   ;;  %p2252_p0 = pmov %p2251_p3 }
  0x94   : > { %1765 = vsyncadd (%p2252_p0), [#allocation6], 4294966272  ;;  %p2253_p13 = pmov %p2252_p0 }
  0x95   : > { %p2254_p7 = pmov %p2252_p0 }
  0x96   : > { %1767 = dma.done.wait (%p2253_p13), [#allocation9], 3072  }
  0x97   : > { %1769 = vsyncadd (%p2254_p7), [#allocation9], 4294964224  ;;  %p2255_p9 = pmov %p2252_p0 }
  0x98   : > { %p2256_p10 = pmov %p2252_p0 }
  0x99   : > { %1771 = dma.done.wait (%p2255_p9), [#allocation12], 1024  }
  0x9a   : > { %1773 = vsyncadd (%p2256_p10), [#allocation12], 4294966272  ;;  %v1808_v0 = vmov 0.0   ;;  %vm1809_vm0 = vmmov 0   ;;  %v1472_v1 = vld [vmem:[#allocation7 + $0x38] sm:$0xff]   ;;  %v1473_v2 = vld [vmem:[#allocation7 + $0x30] sm:$0xff]   ;;  %v642_v50 = vlaneseq }
  0x9b   : > { %1308 = vmatprep.subr.bf16.mxu0 %v1808_v0  ;;  %1324 = vmatprep.mubr.msk.bf16.mxu0 %vm1809_vm0, %v1808_v0  ;;  %v1474_v3 = vld [vmem:[#allocation7 + $0x28] sm:$0xff]   ;;  %v1480_v4 = vld [vmem:[#allocation8 + $0x74] ss:$8 sps:$4 sm:$0xff]   ;;  %v1482_v5 = vld [vmem:[#allocation8 + $0x70] ss:$8 sps:$4 sm:$0xff]   ;;  %v1810_v27 = vmov 0  }
  0x9c   : > { %1309 = vmatpush3.bf16.msra.mxu0 %v1472_v1  ;;  %v1475_v6 = vld [vmem:[#allocation7 + $0x20] sm:$0xff]   ;;  %732 = vmatprep.subr.bf16.mxu1 %v1480_v4  ;;  %v1486_v9 = vld [vmem:[#allocation8 + $0x54] ss:$8 sps:$4 sm:$0xff]   ;;  %v1488_v11 = vld [vmem:[#allocation8 + $0x50] ss:$8 sps:$4 sm:$0xff]   ;;  %v643_v51 = vshrl.u32 %v642_v50, 7 }
  0x9d   : > { %1310 = vmatprep.subr.bf16.mxu0 %v1808_v0  ;;  %v1483_v7 = vld [vmem:[#allocation8 + $0x64] ss:$8 sps:$4 sm:$0xff]   ;;  %733 = vmatpush1.bf16.msra.mxu1 %v1482_v5  ;;  %v1485_v8 = vld [vmem:[#allocation8 + $0x60] ss:$8 sps:$4 sm:$0xff]   ;;  %v1476_v10 = vld [vmem:[#allocation7 + $0x18] sm:$0xff]   ;;  %s1228_s13 = sshll.u32 %s2071_s28, 4 }
  0x9e   : > { %734 = vmatprep.subr.bf16.mxu1 %v1483_v7  ;;  %v1477_v12 = vld [vmem:[#allocation7 + $0x10] sm:$0xff]   ;;  %v1489_v13 = vld [vmem:[#allocation8 + $0x44] ss:$8 sps:$4 sm:$0xff]   ;;  %v1491_v14 = vld [vmem:[#allocation8 + $0x40] ss:$8 sps:$4 sm:$0xff]   ;;  %764 = vmatprep.mubr.bf16.mxu1 %v1810_v27  ;;  %v644_v52 = vsub.s32 0, %v643_v51 }
  0x9f   : > { %v1492_v15 = vld [vmem:[#allocation8 + $0x34] ss:$8 sps:$4 sm:$0xff]   ;;  %v1478_v16 = vld [vmem:[#allocation7 + $0x8] sm:$0xff]   ;;  %v1494_v17 = vld [vmem:[#allocation8 + $0x30] ss:$8 sps:$4 sm:$0xff]   ;;  %v648_v54 = vsub.s32 1, %v643_v51 }
  0xa0   : > { %1311 = vmatpush3.bf16.msra.mxu0 %v1473_v2  ;;  %v1495_v18 = vld [vmem:[#allocation8 + $0x24] ss:$8 sps:$4 sm:$0xff]   ;;  %v1497_v21 = vld [vmem:[#allocation8 + $0x20] ss:$8 sps:$4 sm:$0xff]   ;;  %v1498_v23 = vld [vmem:[#allocation8 + $0x14] ss:$8 sps:$4 sm:$0xff]  }
  0xa1   : > { %1312 = vmatprep.subr.bf16.mxu0 %v1808_v0  ;;  %735 = vmatpush1.bf16.msra.mxu1 %v1485_v8  ;;  %v1479_v19 = vld [vmem:[#allocation7] sm:$0xff]   ;;  %v1500_v24 = vld [vmem:[#allocation8 + $0x10] ss:$8 sps:$4 sm:$0xff]   ;;  %v1506_v38 = vld [vmem:[#allocation10 + $0x28] sm:$0xff]   ;;  %s2138_s29 = scalar_lea.vmem [#allocation14], %s1228_s13  ;;  %s1280_s14 = sshll.u32 %s1894_s23, 8 }
  0xa2   : > { %736 = vmatprep.subr.bf16.mxu1 %v1486_v9  ;;  %v509_v20 = vld [vmem:[%s434_s6] sm:$0xff]  ;;  %v1504_v28 = vld [vmem:[#allocation10 + $0x38] sm:$0xff]   ;;  %v1505_v37 = vld [vmem:[#allocation10 + $0x30] sm:$0xff]   ;;  %s1046_s21 = sshll.u32 %s2138_s29, 4  ;;  %s1044_s6 = scalar_lea.hbm %s2221_s11, %s1280_s14  ;;  %s1047_s21 = int_to_ptr.vmem [resolvable:$true] %s1046_s21 }
  0xa3   : > { %v510_v22 = vpack.c.bf16 %v509_v20, %v509_v20  ;;  %v1501_v25 = vld [vmem:[#allocation8 + $0x4] ss:$8 sps:$4 sm:$0xff]   ;;  %v1503_v26 = vld [vmem:[#allocation8] ss:$8 sps:$4 sm:$0xff]   ;;  %v1508_v40 = vld [vmem:[#allocation10 + $0x18] sm:$0xff]   ;;  %s1019_s4 = scalar_lea.sflag [#allocation15], %s2071_s28 }
  0xa4   : > { %1313 = vmatpush3.bf16.msra.mxu0 %v1474_v3  ;;  %v1229_v29 = vld [vmem:[%s2213_s3] ss:$0 sm:$0xff]  ;;  %v1509_v41 = vld [vmem:[#allocation10 + $0x10] sm:$0xff]   ;;  %v1510_v42 = vld [vmem:[#allocation10 + $0x8] sm:$0xff]   ;;  %s1686_s24 = scalar_lea.vmem %s1047_s21, 256  ;;  %p2257_p6 = scmp.ne.s32.totalorder %s2245_s26, 0 }
  0xa5   : > { %1314 = vmatprep.subr.bf16.mxu0 %v1808_v0  ;;  %737 = vmatpush1.bf16.msra.mxu1 %v1488_v11  ;;  %v1507_v39 = vld [vmem:[#allocation10 + $0x20] sm:$0xff]   ;;  %v1512_v44 = vld [vmem:[#allocation11 + $0x38] sm:$0xff]   ;;  %v1513_v45 = vld [vmem:[#allocation11 + $0x30] sm:$0xff]   ;;  %p1687_p11 = scmp.ne.s32.totalorder %s1047_s21, %s1686_s24 }
  0xa6   : > { %738 = vmatprep.subr.bf16.mxu1 %v1489_v13  ;;  %v1511_v43 = vld [vmem:[#allocation10] sm:$0xff]   ;;  %v1514_v46 = vld [vmem:[#allocation11 + $0x28] sm:$0xff]   ;;  %v1516_v48 = vld [vmem:[#allocation11 + $0x18] sm:$0xff]  }
  0xa7   : > { %v1515_v47 = vld [vmem:[#allocation11 + $0x20] sm:$0xff]   ;;  %v1517_v49 = vld [vmem:[#allocation11 + $0x10] sm:$0xff]   ;;  %v1518_v7 = vld [vmem:[#allocation11 + $0x8] sm:$0xff]   ;;  %p1688_p4 = pnand %p1687_p11, %p2257_p6 }
  0xa8   : > { %1315 = vmatpush3.bf16.msra.mxu0 %v1475_v6  ;;  %v640_v53 = vld [vmem:[%s2215_s5] sm:$0x3]  ;;  %v776_v2 = vld [vmem:[%s443_s25] sm:$0xff]  ;;  %s1811_s25 = smov [#allocation14]  }
  0xa9   : > { %1316 = vmatprep.subr.bf16.mxu0 %v1808_v0  ;;  %739 = vmatpush1.bf16.msra.mxu1 %v1491_v14  ;;  %v645_v55 = vrot.slane %v640_v53, %v644_v52  ;;  %v649_v56 = vrot.slane %v640_v53, %v648_v54  ;;  %v1519_v8 = vld [vmem:[#allocation11] sm:$0xff]   ;;  %p1689_p8 = pneg %p1688_p4  ;;  %s1690_s12 = sshll.u32 %s1811_s25, 4  ;;  %s1691_s12 = int_to_ptr.vmem [resolvable:$false] %s1690_s12 }
  0xaa   : > { %740 = vmatprep.subr.bf16.mxu1 %v1492_v15  ;;  %v1254_v9 = vld [vmem:[%s2217_s7] ss:$0 sm:$0xff]  ;;  %s1692_s22 = scalar_lea.vmem %s1691_s12, 512  ;;  %p1693_p1 = scmp.lt.s32.totalorder %s1047_s21, %s1691_s12 }
  0xab   : > { %p1694_p5 = scmp.lt.s32.totalorder %s1692_s22, %s1686_s24 }
  0xac   : > { %1317 = vmatpush3.bf16.msra.mxu0 %v1476_v10 }
  0xad   : > { %1318 = vmatprep.subr.bf16.mxu0 %v1808_v0  ;;  %741 = vmatpush1.bf16.msra.mxu1 %v1494_v17  ;;  %p1695_p12 = por %p1694_p5, %p1693_p1 }
  0xae   : > { %742 = vmatprep.subr.bf16.mxu1 %v1495_v18 }
  0xaf   : > { %p1696_p2 = pnand %p1695_p12, %p1689_p8 }
  0xb0   : > { %1319 = vmatpush3.bf16.msra.mxu0 %v1477_v12 }
  0xb1   : > { %1320 = vmatprep.subr.bf16.mxu0 %v1808_v0  ;;  %743 = vmatpush1.bf16.msra.mxu1 %v1497_v21 }
  0xb2   : > { %744 = vmatprep.subr.bf16.mxu1 %v1498_v23 }
  0xb4   : > { %1321 = vmatpush3.bf16.msra.mxu0 %v1478_v16 }
  0xb5   : > { %1322 = vmatprep.subr.bf16.mxu0 %v1808_v0  ;;  %745 = vmatpush1.bf16.msra.mxu1 %v1500_v24 }
  0xb6   : > { %746 = vmatprep.subr.bf16.mxu1 %v1501_v25 }
  0xb8   : > { %1323 = vmatpush3.bf16.msra.mxu0 %v1479_v19 }
  0xb9   : > { %1328 = vmatprep.subr.bf16.mxu0 %v1808_v0  ;;  %747 = vmatpush1.bf16.msra.mxu1 %v1503_v26 }
  0xba   : > { %1348 = vmatprep.subr.bf16.mxu1 %v1808_v0 }
  0xbb   : > { %1325 = vmatmul.mubr.bf16.vlgmr.msra.gmra.mxu0 %v510_v22 }
  0xbc   : > { %1344 = vmatprep.mubr.msk.bf16.mxu0 %vm1809_vm0, %v1808_v0  ;;  %1329 = vmatpush3.bf16.msra.mxu0 %v1504_v28 }
  0xbd   : > { %1330 = vmatprep.subr.bf16.mxu0 %v1808_v0 }
  0xc0   : > { %1331 = vmatpush3.bf16.msra.mxu0 %v1505_v37 }
  0xc1   : > { %1332 = vmatprep.subr.bf16.mxu0 %v1808_v0 }
  0xc4   : > { %1333 = vmatpush3.bf16.msra.mxu0 %v1506_v38 }
  0xc5   : > { %1334 = vmatprep.subr.bf16.mxu0 %v1808_v0 }
  0xc8   : > { %1335 = vmatpush3.bf16.msra.mxu0 %v1507_v39 }
  0xc9   : > { %1336 = vmatprep.subr.bf16.mxu0 %v1808_v0 }
  0xcc   : > { %1337 = vmatpush3.bf16.msra.mxu0 %v1508_v40 }
  0xcd   : > { %1338 = vmatprep.subr.bf16.mxu0 %v1808_v0 }
  0xd0   : > { %1339 = vmatpush3.bf16.msra.mxu0 %v1509_v41 }
  0xd1   : > { %1340 = vmatprep.subr.bf16.mxu0 %v1808_v0 }
  0xd4   : > { %1341 = vmatpush3.bf16.msra.mxu0 %v1510_v42 }
  0xd5   : > { %1342 = vmatprep.subr.bf16.mxu0 %v1808_v0 }
  0xd8   : > { %1343 = vmatpush3.bf16.msra.mxu0 %v1511_v43 }
 0x17b   : > { %v616_v30 = vpop.f32.mrf.mxu0 }
 0x17c   : > { %v617_v31 = vadd.f32 %v1229_v29, %v616_v30 }
 0x17d   : > { %v1326_v32 = vpop.f32.mrf.mxu0 }
 0x17e   : > { %v622_v33 = vmax.f32 %v617_v31, 0.0 }
 0x17f   : > { %v619_v34 = vpop.f32.mrf.mxu0 }
 0x180   : > { %v623_v35 = vpack.c.bf16 %v622_v33, %v622_v33 }
 0x181   : > { %v1327_v36 = vpop.f32.mrf.mxu0 }
 0x182   : > { %765 = vmatmul.mubr.bf16.vlgmr.msra.gmra.mxu1 %v623_v35 }
 0x183   : > { %1364 = vmatprep.mubr.msk.bf16.mxu1 %vm1809_vm0, %v1808_v0  ;;  %1349 = vmatpush3.bf16.msra.mxu1 %v1512_v44 }
 0x184   : > { %1350 = vmatprep.subr.bf16.mxu1 %v1808_v0 }
 0x187   : > { %1351 = vmatpush3.bf16.msra.mxu1 %v1513_v45 }
 0x188   : > { %1352 = vmatprep.subr.bf16.mxu1 %v1808_v0 }
 0x18b   : > { %1353 = vmatpush3.bf16.msra.mxu1 %v1514_v46 }
 0x18c   : > { %1354 = vmatprep.subr.bf16.mxu1 %v1808_v0 }
 0x18f   : > { %1355 = vmatpush3.bf16.msra.mxu1 %v1515_v47 }
 0x190   : > { %1356 = vmatprep.subr.bf16.mxu1 %v1808_v0 }
 0x193   : > { %1357 = vmatpush3.bf16.msra.mxu1 %v1516_v48 }
 0x194   : > { %1358 = vmatprep.subr.bf16.mxu1 %v1808_v0 }
 0x197   : > { %1359 = vmatpush3.bf16.msra.mxu1 %v1517_v49 }
 0x198   : > { %1360 = vmatprep.subr.bf16.mxu1 %v1808_v0 }
 0x19b   : > { %1361 = vmatpush3.bf16.msra.mxu1 %v1518_v7 }
 0x19c   : > { %1362 = vmatprep.subr.bf16.mxu1 %v1808_v0 }
 0x19f   : > { %1363 = vmatpush3.bf16.msra.mxu1 %v1519_v8 }
 0x242   : > { %v766_v57 = vpop.f32.mrf.mxu1 }
 0x243   : > { %v767_v58 = vadd.f32 %v766_v57, %v645_v55 }
 0x244   : > { %v768_v59 = vpop.f32.mrf.mxu1 }
 0x245   : > { %1011 = vst [vmem:[%s2138_s29] sm:$0xff] %v767_v58  ;;  %v769_v60 = vadd.f32 %v768_v59, %v649_v56 }
 0x246   : > { %v770_v61 = vpop.f32.mrf.mxu1 }
 0x247   : > { %v773_v62 = vmul.f32 0.5, %v769_v60  ;;  %1012 = vst [vmem:[%s2138_s29 + $0x8] sm:$0xff] %v769_v60 }
 0x248   : > { %v771_v63 = vpop.f32.mrf.mxu1 }
 0x249   : > { %v774_v1 = vmul.f32 1.442695, %v773_v62 }
 0x24b   : > { %1520 = vpow2.f32 %v774_v1 }
 0x258   : > { %v1521_v3 = vpop.eup %1520 }
 0x259   : > { %v777_v4 = vmul.f32 %v1521_v3, %v776_v2 }
 0x25b   : > { %v778_v5 = vadd.f32 %v777_v4, %v767_v58 }
 0x25d   : > { %v779_v6 = vpack.c.bf16 %v778_v5, %v778_v5 }
 0x25f   : > { %1345 = vmatmul.mubr.bf16.vlgmr.msra.gmra.mxu0 %v779_v6 }
 0x31f   : > { %v885_v10 = vpop.f32.mrf.mxu0 }
 0x320   : > { %v886_v11 = vadd.f32 %v1254_v9, %v885_v10 }
 0x321   : > { %v1346_v12 = vpop.f32.mrf.mxu0 }
 0x322   : > { %v891_v13 = vmax.f32 %v886_v11, 0.0 }
 0x323   : > { %v888_v14 = vpop.f32.mrf.mxu0 }
 0x324   : > { %v892_v15 = vpack.c.bf16 %v891_v13, %v891_v13 }
 0x325   : > { %v1347_v16 = vpop.f32.mrf.mxu0 }
 0x326   : > { %1365 = vmatmul.mubr.bf16.vlgmr.msra.gmra.mxu1 %v892_v15 }
 0x327   : > { %1699 = shalt.err (!%p1696_p2)
}
 0x328   : > { %s1700_s16 = scalar_lea.hbm %s1044_s6, 256  ;;  %s1704_s29 = scalar_lea.hbm %s2221_s11, 1024 }
 0x329   : > { %p1701_p3 = scmp.ne.s32.totalorder %s1044_s6, %s1700_s16  ;;  %p1705_p7 = scmp.lt.s32.totalorder %s1044_s6, %s2221_s11 }
 0x32a   : > { %p1706_p9 = scmp.lt.s32.totalorder %s1704_s29, %s1700_s16 }
 0x32b   : > { %p1702_p0 = pnand %p1701_p3, %p2257_p6 }
 0x32c   : > { %p1707_p10 = por %p1706_p9, %p1705_p7 }
 0x32d   : > { %p1703_p13 = pneg %p1702_p0 }
 0x32f   : > { %p1708_p11 = pnand %p1707_p10, %p1703_p13 }
 0x331   : > { %1711 = shalt.err (!%p1708_p11)
}
 0x332   : > { %1389 = dma.vmem_to_hbm [thread:$0]  (%p2257_p6), %s1047_s21, 256, %s1044_s6, %s1019_s4   ;;  %v1263_v0 = vld [vmem:[%s2219_s9] ss:$0 sm:$0xff] }
 0x333   : > { %s1275_s27 = sshll.u32 %s1894_s23, 7  ;;  %s500_s24 = scalar_lea.vmem [#allocation13], %s2074_s19 }
 0x334   : > { %s1032_s25 = sshll.u32 %s500_s24, 4  ;;  %s2174_s4 = scalar_lea.hbm %s2220_s10, %s1275_s27  ;;  %s1033_s25 = int_to_ptr.vmem [resolvable:$true] %s1032_s25 }
 0x335   : > { %s1014_s12 = scalar_lea.sflag [#allocation4], %s2071_s28  ;;  %s1712_s22 = scalar_lea.vmem %s1033_s25, 128 }
 0x336   : > { %p1713_p4 = scmp.ne.s32.totalorder %s1033_s25, %s1712_s22  ;;  %s1812_s16 = smov [#allocation13]  }
 0x337   : > { %s1716_s8 = sshll.u32 %s1812_s16, 4  ;;  %s1717_s8 = int_to_ptr.vmem [resolvable:$false] %s1716_s8 }
 0x338   : > { %p1714_p8 = pnand %p1713_p4, %p2257_p6  ;;  %s1718_s23 = scalar_lea.vmem %s1717_s8, 256 }
 0x339   : > { %p1719_p5 = scmp.lt.s32.totalorder %s1033_s25, %s1717_s8  ;;  %p1720_p12 = scmp.lt.s32.totalorder %s1718_s23, %s1712_s22 }
 0x33a   : > { %p1715_p1 = pneg %p1714_p8 }
 0x33b   : > { %p1721_p2 = por %p1720_p12, %p1719_p5 }
 0x33d   : > { %p1722_p3 = pnand %p1721_p2, %p1715_p1 }
 0x3e6   : > { %v998_v17 = vpop.f32.mrf.mxu1 }
 0x3e7   : > { %v999_v18 = vadd.f32 %v1263_v0, %v998_v17 }
 0x3e8   : > { %v1366_v19 = vpop.f32.mrf.mxu1 }
 0x3e9   : > { %v1272_v20 = vmul.f32 -1.442695, %v999_v18 }
 0x3ea   : > { %v1001_v21 = vpop.f32.mrf.mxu1 }
 0x3eb   : > { %1522 = vpow2.f32 %v1272_v20 }
 0x3ec   : > { %v1367_v22 = vpop.f32.mrf.mxu1 }
 0x3f8   : > { %v1523_v23 = vpop.eup %1522 }
 0x3f9   : > { %v1007_v24 = vadd.f32 1.0, %v1523_v23 }
 0x3fb   : > { %1524 = vrcp.f32 %v1007_v24 }
 0x408   : > { %v1525_v25 = vpop.eup %1524 }
 0x409   : > { %1010 = vst [vmem:[%s500_s24] sm:$0xff] %v1525_v25 }
 0x40a   : > { %1725 = shalt.err (!%p1722_p3)
}
 0x40b   : > { %s1726_s19 = scalar_lea.hbm %s2174_s4, 128  ;;  %s1730_s29 = scalar_lea.hbm %s2220_s10, 512 }
 0x40c   : > { %p1727_p0 = scmp.ne.s32.totalorder %s2174_s4, %s1726_s19  ;;  %p1731_p9 = scmp.lt.s32.totalorder %s2174_s4, %s2220_s10 }
 0x40d   : > { %p1732_p10 = scmp.lt.s32.totalorder %s1730_s29, %s1726_s19 }
 0x40e   : > { %p1728_p13 = pnand %p1727_p0, %p2257_p6 }
 0x40f   : > { %p1733_p11 = por %p1732_p10, %p1731_p9 }
 0x410   : > { %p1729_p7 = pneg %p1728_p13 }
 0x412   : > { %p1734_p4 = pnand %p1733_p11, %p1729_p7 }
 0x414   : > { %1737 = shalt.err (!%p1734_p4)
}
 0x415   : > { %1388 = dma.vmem_to_hbm [thread:$0]  (%p2257_p6), %s1033_s25, 128, %s2174_s4, %s1014_s12  }
 0x416 PF: > { %s2258_s14 = sld [smem:[#allocation26_spill]]  ;;  %p1428_p8 = scmp.ge.s32.totalorder %s1796_s20, 2 }
 0x417   : > { %s1058_s30 = sand.u32 1, %s1784_s17  }
 0x418   : > { %s1059_s27 = scalar_lea.sflag [#allocation4], %s1058_s30 }
 0x41c   : > { %p2259_p1 = scmp.ne.s32.totalorder %s2258_s14, 0 }
 0x41e   : > { %p1413_p5 = pnand %p1428_p8, %p2259_p1 }
 0x420   : > { %p1414_p12 = pneg %p1413_p5 }
 0x422   : > { %1775 = dma.done.wait (%p1414_p12), %s1059_s27, 128  }
 0x423   : > { %1777 = vsyncadd (%p1414_p12), %s1059_s27, 4294967168  ;;  %s1068_s24 = scalar_lea.sflag [#allocation15], %s1058_s30 }
 0x424   : > { %1779 = dma.done.wait (%p1414_p12), %s1068_s24, 256  }
 0x425   : > { %1781 = vsyncadd (%p1414_p12), %s1068_s24, 4294967040  ;;  %s2260_s20 = sld [smem:[#allocation24_spill]]  ;;  %s2263_s17 = smov %s1788_s18 }
 0x426   : > { %s2261_s26 = sld [smem:[#allocation23_spill]] }
 0x427   : > { %s2262_s19 = sld [smem:[#allocation25_spill]] }
 0x42b   : > { %p33_p6 = scmp.ge.s32.totalorder %s2260_s20, 6  }
 0x42c   : > { %s2264_s18 = smov %s2261_s26 }
 0x42d   :  { %35 = sbr.rel (!%p33_p6) target bundleno = 16 (0x10), region = 151 }
 0x432   :  { %1073 = vsyncpa [#allocation3], 1 }
 0x433   :  { %1075 = vsyncpa [#allocation3 + $0x1], 1 }
 0x434   :  { %1076 = vsyncpa [#allocation6], 1 }
 0x435   :  { %1078 = vsyncpa [#allocation6 + $0x1], 1 }
 0x436   :  { %1079 = vsyncpa [#allocation9], 1 }
 0x437   :  { %1080 = vsyncpa [#allocation12], 1 }
 0x438   :  { %1081 = vsyncpa [#allocation4], 1 }
 0x439   :  { %1083 = vsyncpa [#allocation4 + $0x1], 1 }
 0x43a   :  { %1084 = vsyncpa [#allocation15], 1 }
 0x43b   :  { %1086 = vsyncpa [#allocation15 + $0x1], 1 }

</bundles_post_ra>
